<compile_context>
chip_gen: v5e
topology: v5e:2x2
jax: 0.10.0
libtpu: 0.0.40
codegen_flags: <defaults>
</compile_context>

<pallas_src>
import jax
import jax.numpy as jnp
from jax.experimental import pallas as pl
from jax.experimental.pallas import tpu as pltpu


_TARGET_BLOCK_BYTES = 4 << 20  # ~4 MiB blocks; double-buffered in+out ~16 MiB


def _pick_lane_tile(n, row_bytes, target_block_bytes):
    """Fixed lane tile (multiple of 128) used with a cdiv grid.

    row_bytes = bytes of one lane-column across all sublane rows in a block.
    Guarantees >= 2 grid steps whenever n > 128 so that v7x's two TensorCores
    both get work under dimension_semantics=("parallel",).
    """
    if n <= 128:
        return n  # full-extent block is always legal; nothing to split
    budget = max(128, (target_block_bytes // max(1, row_bytes)) // 128 * 128)
    n_pad = pl.cdiv(n, 128) * 128
    tile = min(budget, n_pad)
    if pl.cdiv(n, tile) < 2:
        tile = max(128, pl.cdiv(pl.cdiv(n, 2), 128) * 128)
    return tile


def _vmem_limit(total_block_bytes):
    # >= 32 MiB so v5e's 16 MiB default scoped limit is not binding;
    # <= 48 MiB to stay well inside v7x's 64 MiB physical VMEM.
    return int(min(48 << 20, max(32 << 20, 2 * total_block_bytes + (4 << 20))))


def _make_fused_kernel(B, C, rows, itemsize):
    """Single-read kernel: all B*C rows in one block, batch roll done in VMEM."""
    shift = C % rows  # roll batch by 1 == roll (B*C) row axis by C
    sublanes_per_vreg = max(1, (8 * 4) // itemsize)  # 8 f32 / 16 bf16 / 32 i8
    use_xlu_roll = (B > 1) and (shift != 0) and (rows % sublanes_per_vreg == 0)

    def kernel(x_ref, m_ref, o_ref):
        x = x_ref[...]  # (rows, tile) — the single HBM read of the batch tile
        if B == 1 or shift == 0:
            rolled = x  # roll of a size-1 batch axis is the identity
        elif use_xlu_roll:
            # XLU sublane rotate: no extra VMEM copy, uses an otherwise idle slot.
            rolled = pltpu.roll(x, shift=shift, axis=0)
        else:
            # Fallback for sublane-misaligned row counts (e.g. B*C = 6).
            rolled = jnp.concatenate([x[rows - shift:, :], x[:rows - shift, :]], axis=0)
        # batch[:, :, y1:y2, x1:x2] = batch_rolled[:, :, y1:y2, x1:x2]
        o_ref[...] = jnp.where(m_ref[...] != 0, rolled, x)

    return kernel


def _cutmix_fused(batch, mask_hw, target_block_bytes=_TARGET_BLOCK_BYTES):
    """Preferred path: one HBM read of the batch, roll performed in VMEM."""
    B, C, H, W = batch.shape
    rows, n = B * C, H * W
    itemsize = batch.dtype.itemsize

    x2d = batch.reshape(rows, n)        # lane-dense contiguous view (free)
    m2d = mask_hw.reshape(1, n).astype(jnp.int8)

    tile = _pick_lane_tile(n, rows * itemsize, target_block_bytes)
    grid = (pl.cdiv(n, tile),)
    block_bytes = rows * tile * itemsize
    total_block_bytes = 2 * block_bytes + tile  # in + out + mask

    out2d = pl.pallas_call(
        _make_fused_kernel(B, C, rows, itemsize),
        out_shape=jax.ShapeDtypeStruct((rows, n), batch.dtype),
        grid_spec=pltpu.PrefetchScalarGridSpec(
            num_scalar_prefetch=0,
            grid=grid,
            in_specs=[
                pl.BlockSpec((rows, tile), lambda t: (0, t)),
                pl.BlockSpec((1, tile), lambda t: (0, t)),
            ],
            out_specs=pl.BlockSpec((rows, tile), lambda t: (0, t)),
        ),
        # Each grid step reads and writes the same block index -> safe to
        # alias the batch buffer to the output (in-place augmentation).
        input_output_aliases={0: 0},
        compiler_params=pltpu.CompilerParams(
            dimension_semantics=("parallel",),
            vmem_limit_bytes=_vmem_limit(total_block_bytes),
        ),
        cost_estimate=pl.CostEstimate(
            flops=0,
            transcendentals=0,
            bytes_accessed=int(2 * rows * n * itemsize + n),
        ),
    )(x2d, m2d)
    return out2d.reshape(B, C, H, W)


def _cutmix_batch_tiled(batch, mask_hw, target_block_bytes=_TARGET_BLOCK_BYTES):
    """Fallback for very large B*C: batch-tiled, two reads of the batch.

    The rolled view is the same array streamed through a second BlockSpec
    whose batch block index is offset by one.  No aliasing (the rolled view
    reads blocks an aliased output would already have overwritten).
    """
    B, C, H, W = batch.shape
    n = H * W
    itemsize = batch.dtype.itemsize

    x3d = batch.reshape(B, C, n)
    m3d = mask_hw.reshape(1, 1, n).astype(jnp.int8)

    tile = _pick_lane_tile(n, C * itemsize, target_block_bytes)
    grid = (B, pl.cdiv(n, tile))
    block_bytes = C * tile * itemsize
    total_block_bytes = 3 * block_bytes + tile  # x + rolled + out + mask

    def kernel(x_ref, xr_ref, m_ref, o_ref):
        o_ref[...] = jnp.where(m_ref[...] != 0, xr_ref[...], x_ref[...])

    out3d = pl.pallas_call(
        kernel,
        out_shape=jax.ShapeDtypeStruct((B, C, n), batch.dtype),
        grid_spec=pltpu.PrefetchScalarGridSpec(
            num_scalar_prefetch=0,
            grid=grid,
            in_specs=[
                pl.BlockSpec((1, C, tile), lambda b, t: (b, 0, t)),
                pl.BlockSpec((1, C, tile), lambda b, t: ((b - 1) % B, 0, t)),
                pl.BlockSpec((1, 1, tile), lambda b, t: (0, 0, t)),
            ],
            out_specs=pl.BlockSpec((1, C, tile), lambda b, t: (b, 0, t)),
        ),
        compiler_params=pltpu.CompilerParams(
            dimension_semantics=("parallel", "parallel"),
            vmem_limit_bytes=_vmem_limit(total_block_bytes),
        ),
        cost_estimate=pl.CostEstimate(
            flops=0,
            transcendentals=0,
            bytes_accessed=int(3 * B * C * n * itemsize + B * n),
        ),
    )(x3d, x3d, m3d)
    return out3d.reshape(B, C, H, W)


def cutmix_pallas(batch, mask_hw):
    """batch: float[B, C, H, W]; mask_hw: int8[H, W] (1 inside the cut box)."""
    B, C, H, W = batch.shape
    rows = B * C
    itemsize = batch.dtype.itemsize
    # Row-axis VMEM floor of the single-read design: rows * 128 * itemsize per
    # block.  If even a 128-lane block blows the block budget, fall back to
    # the batch-tiled two-read path (trades 1.5x HBM reads for bounded VMEM).
    if rows * 128 * itemsize <= _TARGET_BLOCK_BYTES:
        return _cutmix_fused(batch, mask_hw)
    return _cutmix_batch_tiled(batch, mask_hw)


def cutmix_forward(batch, target, num_classes, p, alpha, key):
    """Mirrors CutMix.forward.  target: int[B] class ids (int32; JAX has no
    default int64 — semantics are identical)."""
    B, C, H, W = batch.shape

    k_coin, k_lam, k_x, k_y = jax.random.split(key, 4)

    # torch.rand(1).item() >= self.p  -> skip transform
    apply = jax.random.uniform(k_coin) < p

    # lambda ~ Beta(alpha, alpha)  (Dirichlet([a, a])[0] == Beta(a, a))
    lam = jax.random.beta(k_lam, alpha, alpha)

    r_x = jax.random.randint(k_x, (), 0, W, dtype=jnp.int32)
    r_y = jax.random.randint(k_y, (), 0, H, dtype=jnp.int32)
    r = 0.5 * jnp.sqrt(1.0 - lam)
    r_w_half = (r * W).astype(jnp.int32)  # int() truncation (nonnegative)
    r_h_half = (r * H).astype(jnp.int32)

    x1 = jnp.maximum(r_x - r_w_half, 0)
    y1 = jnp.maximum(r_y - r_h_half, 0)
    x2 = jnp.minimum(r_x + r_w_half, W)
    y2 = jnp.minimum(r_y + r_h_half, H)

    box = jnp.stack([y1, y2, x1, x2]).astype(jnp.int32)
    # Empty box (=> lam_adj == 1, all-zero mask) when the coin flip says no.
    box = jnp.where(apply, box, jnp.zeros((4,), jnp.int32))
    y1b, y2b, x1b, x2b = box[0], box[1], box[2], box[3]

    # Precomputed (H, W) int8 cut-box mask: 1 B/pixel of auxiliary HBM traffic
    # for the kernel instead of 8 B/pixel of int32 coordinates.
    hh = jnp.arange(H, dtype=jnp.int32)[:, None]
    ww = jnp.arange(W, dtype=jnp.int32)[None, :]
    mask_hw = (((hh >= y1b) & (hh < y2b)) & ((ww >= x1b) & (ww < x2b))).astype(jnp.int8)

    # Heavy elementwise part in Pallas.
    out_batch = cutmix_pallas(batch, mask_hw)

    # Target mixing in plain JAX, in float32, cast at the end (B x NC floats).
    target_oh = jax.nn.one_hot(target, num_classes, dtype=jnp.float32)
    lam_adj = 1.0 - ((x2b - x1b) * (y2b - y1b)).astype(jnp.float32) / float(W * H)
    out_target = (
        lam_adj * target_oh + (1.0 - lam_adj) * jnp.roll(target_oh, 1, axis=0)
    ).astype(batch.dtype)
    return (out_batch, out_target), box


if __name__ == "__main__":
    B, C, H, W = 2, 4, 16, 16
    num_classes = 5
    p, alpha = 0.5, 1.0

    key = jax.random.PRNGKey(0)
    k_data, k_tgt, k_fwd = jax.random.split(key, 3)

    batch = jax.random.normal(k_data, (B, C, H, W), dtype=jnp.float32)
    target = jax.random.randint(k_tgt, (B,), 0, num_classes, dtype=jnp.int32)

    (out_batch, out_target), box = cutmix_forward(
        batch, target, num_classes, p, alpha, k_fwd
    )
    out_batch = jax.block_until_ready(out_batch)
    out_target = jax.block_until_ready(out_target)

    # Pure-JAX reference check (same semantics as the PyTorch module).
    y1, y2, x1, x2 = (int(v) for v in box)
    lam_adj = 1.0 - (x2 - x1) * (y2 - y1) / float(W * H)
    rolled = jnp.roll(batch, 1, axis=0)
    rr = jnp.arange(H)[:, None]
    cc = jnp.arange(W)[None, :]
    mask = (rr >= y1) & (rr < y2) & (cc >= x1) & (cc < x2)
    ref_batch = jnp.where(mask[None, None], rolled, batch)
    oh = jax.nn.one_hot(target, num_classes, dtype=jnp.float32)
    ref_target = lam_adj * oh + (1.0 - lam_adj) * jnp.roll(oh, 1, axis=0)

    assert jnp.allclose(out_batch, ref_batch, atol=1e-6), "batch mismatch"
    assert jnp.allclose(out_target, ref_target, atol=1e-6), "target mismatch"

    # Also exercise the large-batch (batch-tiled, two-read) fallback path once.
    out_tiled = jax.block_until_ready(
        _cutmix_batch_tiled(batch, mask.astype(jnp.int8))
    )
    assert jnp.allclose(out_tiled, ref_batch, atol=1e-6), "tiled-path mismatch"

    print("KERNEL_OK")
</pallas_src>

<mosaic_0001>
module attributes {stable_mosaic.version = 11 : i64} {
  func.func @kernel(%arg0: i32, %arg1: memref<8x128xf32, #tpu.memory_space<vmem>>, %arg2: memref<1x128xi8, #tpu.memory_space<vmem>>, %arg3: memref<8x128xf32, #tpu.memory_space<vmem>>) attributes {dimension_semantics = [#tpu.dimension_semantics<parallel>], iteration_bounds = array<i64: 2>, scalar_prefetch = 0 : i64, scratch_operands = 0 : i64, tpu.core_type = #tpu.core_type<tc>, window_params = [{transform_indices = @transform_0, window_bounds = array<i64: 8, 128>}, {transform_indices = @transform_1, window_bounds = array<i64: 1, 128>}, {transform_indices = @transform_2, window_bounds = array<i64: 8, 128>}]} {
    %c0 = arith.constant 0 : index
    %c0_0 = arith.constant 0 : index
    %0 = vector.load %arg1[%c0, %c0_0] : memref<8x128xf32, #tpu.memory_space<vmem>>, vector<8x128xf32>
    %c4_i32 = arith.constant 4 : i32
    %1 = tpu.dynamic_rotate %0 by %c4_i32 dim 0 : vector<8x128xf32>, i32 -> vector<8x128xf32>
    %c0_1 = arith.constant 0 : index
    %c0_2 = arith.constant 0 : index
    %2 = vector.load %arg2[%c0_1, %c0_2] : memref<1x128xi8, #tpu.memory_space<vmem>>, vector<1x128xi8>
    %c0_i8 = arith.constant 0 : i8
    %3 = vector.broadcast %c0_i8 : i8 to vector<1x128xi8>
    %4 = arith.cmpi ne, %2, %3 : vector<1x128xi8>
    %5 = vector.shape_cast %4 : vector<1x128xi1> to vector<1x128xi1>
    %6 = vector.broadcast %5 : vector<1x128xi1> to vector<8x128xi1>
    %7 = arith.select %6, %1, %0 : vector<8x128xi1>, vector<8x128xf32>
    %c0_3 = arith.constant 0 : index
    %c0_4 = arith.constant 0 : index
    %8 = vector.load %arg3[%c0_3, %c0_4] : memref<8x128xf32, #tpu.memory_space<vmem>>, vector<8x128xf32>
    tpu.vector_store %arg3[%c0_3, %c0_4], %7 {strides = array<i32>} : memref<8x128xf32, #tpu.memory_space<vmem>>, vector<8x128xf32>,
    return
  }
  func.func @transform_0(%arg0: i32) -> (i32, i32) {
    %c0_i32 = arith.constant 0 : i32
    %c0_i32_0 = arith.constant 0 : i32
    return %c0_i32, %arg0 : i32, i32
  }
  func.func @transform_1(%arg0: i32) -> (i32, i32) {
    %c0_i32 = arith.constant 0 : i32
    %c0_i32_0 = arith.constant 0 : i32
    return %c0_i32, %arg0 : i32, i32
  }
  func.func @transform_2(%arg0: i32) -> (i32, i32) {
    %c0_i32 = arith.constant 0 : i32
    %c0_i32_0 = arith.constant 0 : i32
    return %c0_i32, %arg0 : i32, i32
  }
}

</mosaic_0001>

<bundles_post_ra>
// kernel: tpu_custom_call.1
= control target key start
LH: loop header
LB: loop body
LE: loop exit
PB: predicated region body
PF: predicated region fallthrough
CT: control target
= control target key end

     0   :  { %7 = vsyncpa [#allocation3], 0  ;;  %s589_s0 = inlined_call_operand.hbm [shape: f32[8,256], index: 0, kind: input, shape index: {}, may-alias: {0,2}]   ;;  %s590_s1 = inlined_call_operand.vmem [shape: s8[1,256], index: 1, kind: input, shape index: {}]   ;;  %s591_s2 = inlined_call_operand.hbm [shape: f32[8,256], index: 2, kind: output, shape index: {}, may-alias: {0,2}]  }
   0x1   :  { %9 = vsyncpa [#allocation3 + $0x1], 0 }
   0x2   :  { %10 = vsyncpa [#allocation4], 0 }
   0x3   :  { %12 = vsyncpa [#allocation4 + $0x1], 0  ;;  %s457_s9 = smov 0   ;;  %s459_s10 = smov 0  }
   0x4   :  { %s461_s11 = smov 0   ;;  %s463_s12 = smov 0  }
   0x5 LB: > { %s478_s13 = sadd.s32 4294967295, %s439_s12   ;;  %s284_s14 = sadd.s32 4294967294, %s439_s12   ;;  %s439_s12 = sphi %s463_s12, %s601_s12   ;;  %s435_s11 = sphi %s461_s11, %s600_s11   ;;  %s431_s10 = sphi %s459_s10, %s599_s10   ;;  %s427_s9 = sphi %s457_s9, %s598_s9  }
   0x6   : > { %s482_s15 = sadd.s32 1, %s439_s12   ;;  %s25_s16 = sadd.s32 1, %s435_s11 }
   0x7   : > { %s22_s17 = ssub.s32 %s439_s12, %s482_s15  ;;  %p32_p0 = scmp.ne.s32.totalorder %s435_s11, %s431_s10 }
   0x8   : > { %p23_p1 = scmp.eq.s32.totalorder %s22_s17, 0  ;;  %p33_p2 = scmp.eq.s32.totalorder %s439_s12, 0 }
   0x9   : > { %p38_p3 = scmp.ne.s32.totalorder %s431_s10, %s427_s9  ;;  %p39_p4 = scmp.eq.s32.totalorder %s478_s13, 0 }
   0xa   : > { %s494_s18 = scalar_select %p23_p1, %s435_s11, %s25_s16  }
   0xb   : > { %p496_p5 = por %p33_p2, %p32_p0  ;;  %p500_p6 = por %p39_p4, %p38_p3 }
   0xc   : > { %p88_p7 = scmp.eq.s32.totalorder %s478_s13, 1  ;;  %p94_p8 = scmp.eq.s32.totalorder %s284_s14, 1 }
   0xd   : > { %p308_p10 = scmp.lt.s32.totalorder %s439_s12, 2  ;;  %s114_s23 = sand.u32 1, %s435_s11  }
   0xe   : > { %p507_p11 = por %p88_p7, %p32_p0  ;;  %p511_p12 = por %p94_p8, %p38_p3 }
   0xf   : > { %s288_s24 = sshll.u32 %s439_s12, 3  ;;  %s287_s25 = sshll.u32 %s114_s23, 3 }
  0x10   : > { %s122_s28 = scalar_lea.hbm %s589_s0, %s288_s24  ;;  %s118_s30 = scalar_lea.vmem [#allocation2], %s287_s25 }
  0x11   : > { %s124_s29 = sshll.u32 %s122_s28, 4  ;;  %s126_s3 = sshll.u32 %s118_s30, 4  ;;  %s125_s29 = int_to_ptr.hbm [resolvable:$true] %s124_s29  ;;  %s127_s3 = int_to_ptr.vmem [resolvable:$true] %s126_s3 }
  0x12   : > { %p522_p13 = pnand %p308_p10, %p496_p5  ;;  %p289_p0 = scmp.ge.s32.totalorder %s439_s12, 1 }
  0x13   : > { %p137_p1 = scmp.lt.s32.totalorder %s439_s12, 3  ;;  %s115_s5 = scalar_lea.sflag [#allocation3], %s114_s23 }
  0x14   : > { %s343_s6 = sshra.s32 %s125_s29, 4  ;;  %p347_p3 = pneg %p522_p13  ;;  %s344_s6 = int_to_ptr.hbm [resolvable:$true] %s343_s6 }
  0x15   : > { %s345_s7 = scalar_lea.hbm %s344_s6, 8  ;;  %s350_s16 = scalar_lea.hbm %s589_s0, 16 }
  0x16   : > { %p346_p2 = scmp.ne.s32.totalorder %s344_s6, %s345_s7  ;;  %p351_p5 = scmp.lt.s32.totalorder %s344_s6, %s589_s0 }
  0x17   : > { %p352_p8 = scmp.lt.s32.totalorder %s350_s16, %s345_s7 }
  0x18   : > { %p348_p4 = pnand %p347_p3, %p346_p2 }
  0x19   : > { %p353_p10 = por %p352_p8, %p351_p5 }
  0x1a   : > { %p349_p7 = pneg %p348_p4 }
  0x1c   : > { %p354_p9 = pnand %p353_p10, %p349_p7 }
  0x1e   : > { %357 = shalt.err (!%p354_p9)
}
  0x1f   : > { %303 = dma.hbm_to_vmem [thread:$0]  (!%p522_p13), %s125_s29, 128, %s127_s3, %s115_s5  }
  0x20   : > { %p138_p2 = pnand %p289_p0, %p137_p1 }
  0x21   : > { %s543_s23 = sand.u32 (!%p138_p2), 1, %s431_s10  }
  0x22   : > { %141 = sbr.rel (%p138_p2) target bundleno = 59 (0x3b), region = 28  ;;  %s290_s24 = sshll.u32 (!%p138_p2), %s543_s23, 3 }
  0x23   : > { %s144_s25 = scalar_lea.sflag (!%p138_p2), [#allocation3], %s543_s23  ;;  %s147_s26 = scalar_lea.vmem (!%p138_p2), [#allocation2], %s290_s24 }
  0x27   : > { %418 = dma.done.wait (%p500_p6), %s144_s25, 128  }
  0x28   : > { %420 = vsyncadd (%p500_p6), %s144_s25, 4294967168  ;;  %p172_p9 = scmp.lt.s32.totalorder %s478_s13, 1  ;;  %s293_s3 = sshll.u32 %s478_s13, 3  ;;  %v441_v1 = vmov 0   ;;  %v177_v3 = vld [vmem:[%s147_s26] sm:$0xff] }
  0x29   : > { %s200_s5 = scalar_lea.hbm %s591_s2, %s293_s3  ;;  %v178_v5 = vrot.slane %v177_v3, 4  ;;  %s171_s6 = scalar_lea.vmem [#allocation5], %s290_s24 }
  0x2a   : > { %s173_s27 = scalar_select %p172_p9, %s478_s13, 1 }
  0x2b   : > { %s202_s7 = sshll.u32 %s171_s6, 4  ;;  %s204_s8 = sshll.u32 %s200_s5, 4  ;;  %s203_s7 = int_to_ptr.vmem [resolvable:$true] %s202_s7  ;;  %s205_s8 = int_to_ptr.hbm [resolvable:$true] %s204_s8 }
  0x2c   : > { %s174_s30 = scalar_lea.vmem %s590_s1, %s173_s27  ;;  %s190_s13 = scalar_lea.sflag [#allocation4], %s543_s23 }
  0x2d   : > { %v179_v0 = vld [vmem:[%s174_s30] sm:$0x1]  ;;  %s387_s14 = sshra.s32 %s205_s8, 4  ;;  %s393_s24 = scalar_lea.hbm %s591_s2, 16  ;;  %s388_s14 = int_to_ptr.hbm [resolvable:$true] %s387_s14 }
  0x2e   : > { %vm180_vm0 = vnez %v179_v0  ;;  %s389_s16 = scalar_lea.hbm %s388_s14, 8  ;;  %p394_p1 = scmp.lt.s32.totalorder %s388_s14, %s591_s2 }
  0x2f   : > { %v181_v2 = vsel %vm180_vm0, 16843009, %v441_v1  ;;  %p390_p6 = scmp.ne.s32.totalorder %s388_s14, %s389_s16  ;;  %p395_p3 = scmp.lt.s32.totalorder %s393_s24, %s389_s16 }
  0x30   : > { %v182_v4 = vunpack.c.0.s8 %v181_v2 }
  0x31   : > { %p391_p13 = pnand %p390_p6, %p507_p11  ;;  %p396_p4 = por %p395_p3, %p394_p1 }
  0x32   : > { %vm183_vm1 = vcmp.ne.s32.totalorder %v182_v4, 0 }
  0x33   : > { %v184_v6 = vsel %vm183_vm1, 1, %v441_v1  ;;  %p392_p0 = pneg %p391_p13 }
  0x34   : > { %v185_v7 = vperm.slane %v184_v6, 0 }
  0x35   : > { %p397_p7 = pnand %p396_p4, %p392_p0 }
  0x36   : > { %vm186_vm2 = vcmp.eq.s32.totalorder %v185_v7, 1 }
  0x37   : > { %v187_v8 = vsel %vm186_vm2, %v178_v5, %v177_v3 }
  0x38   : > { %188 = vst [vmem:[%s171_s6] sm:$0xff] %v187_v8 }
  0x39   : > { %400 = shalt.err (!%p397_p7)
}
  0x3a   : > { %298 = dma.vmem_to_hbm [thread:$0]  (%p507_p11), %s203_s7, 128, %s205_s8, %s190_s13  }
  0x3b PF: > { %s216_s23 = sand.u32 1, %s427_s9   ;;  %p597_p5 = scmp.ge.s32.totalorder %s439_s12, 2 }
  0x3c   : > { %s217_s27 = scalar_lea.sflag [#allocation4], %s216_s23 }
  0x3d   : > { %p305_p8 = pnand %p597_p5, %p511_p12 }
  0x3f   : > { %p306_p10 = pneg %p305_p8 }
  0x41   : > { %422 = dma.done.wait (%p306_p10), %s217_s27, 128  }
  0x42   : > { %424 = vsyncadd (%p306_p10), %s217_s27, 4294967168  ;;  %p15_p2 = scmp.ge.s32.totalorder %s482_s15, 4   ;;  %s598_s9 = smov %s431_s10 }
  0x43   : > { %s599_s10 = smov %s435_s11  ;;  %s600_s11 = smov %s494_s18 }
  0x44   : > { %s601_s12 = smov %s482_s15  ;;  %17 = sbr.rel (!%p15_p2) target bundleno = 5 (0x5), region = 76 }
  0x49   :  { %223 = vsyncpa [#allocation3], 1 }
  0x4a   :  { %225 = vsyncpa [#allocation3 + $0x1], 1 }
  0x4b   :  { %226 = vsyncpa [#allocation4], 1 }
  0x4c   :  { %228 = vsyncpa [#allocation4 + $0x1], 1 }

</bundles_post_ra>
